<compile_context>
chip_gen: v7x
topology: tpu7x:2x2x1
jax: 0.10.0
libtpu: 0.0.40
codegen_flags: <defaults>
</compile_context>

<pallas_src>
import jax
import jax.numpy as jnp
import numpy as np
from jax.experimental import pallas as pl
from jax.experimental.pallas import tpu as pltpu

# ----------------------------- config (small, synthetic) -----------------------------
B = 2              # batch
S = 8              # sequence length
V = 32             # vocab_size
E = 32             # embedding_size
H = 64             # hidden_size  (!= E -> exercises embed_proj)
HP = 128           # lane-padded hidden size (lane-dense output store; H=64 < 128)
T = 2              # type_vocab_size
P = 16             # max_position_embeddings
LN_EPS = 1e-7      # layer_norm_eps (DeBERTa default)
N = B * S
TN = 8             # rows per grid step (independent rows -> "parallel" axis)


# ----------------------------- kernel -----------------------------
def deberta_emb_kernel(rowpack_ref,                       # (TN,8) f32: [ids_raw, fmask, amask, ids_gather, 0...]
                       word_ref,                          # (V,E) word table (VMEM, dense)
                       pt_ref,                            # (TN,E) precomputed pos+tok rows
                       w1_ref, b1_ref, w2_ref, b2_ref,    # float-MLP params
                       wp_ref, gamma_ref, beta_ref,       # (E,HP), (1,HP), (1,HP) zero-padded
                       out_ref):                          # (TN,HP)
    pk = rowpack_ref[...]                                 # (TN,8)
    ids_raw = pk[:, 0:1]                                  # raw input_ids values (float)
    fmask = pk[:, 1:2]                                    # input_float_mask
    amask = pk[:, 2:3]                                    # attention mask
    ids_g = pk[:, 3:4]                                    # gather ids (trunc + clipped), as f32

    # ---- word embedding lookup: one-hot MXU dot (single vmatmul at V=32/TN=8) ----
    ids_i = ids_g.astype(jnp.int32)                                               # (TN,1)
    vocab_iota = jax.lax.broadcasted_iota(jnp.int32, (TN, V), 1)                  # (TN,V)
    onehot = (vocab_iota == ids_i).astype(jnp.float32)                            # (TN,V)
    # HIGHEST here reconstructs the f32 table row exactly (one-hot operand is
    # exact in bf16); FLOPs are negligible, so this is not an MXU-throughput cost.
    int_vec = jnp.dot(onehot, word_ref[...],
                      precision=jax.lax.Precision.HIGHEST,
                      preferred_element_type=jnp.float32)                         # (TN,E)

    # ---- float embedding MLP: Linear(1,2E) -> ReLU -> Linear(2E,E) ----
    # first layer has K=1 -> pure VPU broadcast multiply instead of a degenerate matmul
    float_vals = ids_raw * fmask                                                  # (TN,1)
    h = jnp.maximum(float_vals * w1_ref[...] + b1_ref[...], 0.0)                  # (TN,2E)
    float_vec = jnp.dot(h, w2_ref[...],
                        preferred_element_type=jnp.float32) + b2_ref[...]         # (TN,E)

    # ---- mix int/float branches, add precomputed position + token-type rows ----
    emb = int_vec * (1.0 - fmask) + float_vec + pt_ref[...]                       # (TN,E)

    # ---- embed_proj (E != H, bias=False); weights zero-padded to HP lanes ----
    emb_h = jnp.dot(emb, wp_ref[...], preferred_element_type=jnp.float32)         # (TN,HP)

    # ---- LayerNorm over the H valid lanes. Padded lanes of emb_h are exactly 0
    #      (wp zero-padded), so one fused sum / sum-of-squares pass needs no mask;
    #      padded output lanes stay 0 because gamma/beta are zero-padded. ----
    inv_h = 1.0 / float(H)
    mean = jnp.sum(emb_h, axis=-1, keepdims=True) * inv_h
    msq = jnp.sum(emb_h * emb_h, axis=-1, keepdims=True) * inv_h
    var = msq - mean * mean
    normed = (emb_h - mean) * jax.lax.rsqrt(var + LN_EPS) * gamma_ref[...] + beta_ref[...]

    # ---- attention mask multiply; full-lane-width store ----
    out_ref[...] = normed * amask
    # TODO(synk): StableDropout omitted (inference/identity path); would need in-kernel PRNG.


# ----------------------------- wrapper -----------------------------
@jax.jit
def deberta_embeddings_mixed(input_ids, input_float_mask, attn_mask, params):
    """input_ids / input_float_mask / attn_mask: (B,S) float32. Returns (B,S,H) float32."""
    ids_raw = input_ids.reshape(N, 1).astype(jnp.float32)
    fmask = input_float_mask.reshape(N, 1).astype(jnp.float32)
    amask = attn_mask.reshape(N, 1).astype(jnp.float32)
    # gather ids: trunc-toward-zero == torch .long(); clamp to table like jnp indexing.
    # (Exact as f32 for any realistic vocab size < 2^24.)
    ids_gather = jnp.clip(input_ids.reshape(N, 1).astype(jnp.int32), 0, V - 1).astype(jnp.float32)
    # pack per-row operands into a single (N,8) input (one DMA instead of several)
    rowpack = jnp.concatenate(
        [ids_raw, fmask, amask, ids_gather, jnp.zeros((N, 4), jnp.float32)], axis=1)     # (N,8)

    # position_ids default = arange(S) per batch row; token_type_ids all zero ->
    # fold both tables into a single static (N,E) constant (parameter-only).
    pos_plus_tok = jnp.tile(params["pos_tab"][:S] + params["tok_tab"][0:1], (B, 1))      # (N,E)

    # project/LN params lane-padded to HP (only because H=64 < 128 at toy size;
    # at real H (multiple of 128) write H directly and drop the padding + slice)
    wp_pad = jnp.zeros((E, HP), jnp.float32).at[:, :H].set(params["wp"])
    gamma_pad = jnp.zeros((1, HP), jnp.float32).at[:, :H].set(params["gamma"])
    beta_pad = jnp.zeros((1, HP), jnp.float32).at[:, :H].set(params["beta"])

    def full_spec(a):
        return pl.BlockSpec(a.shape, lambda i: (0,) * a.ndim)

    in_specs = [
        pl.BlockSpec((TN, 8), lambda i: (i, 0)),        # rowpack (row-tiled)
        full_spec(params["word_tab"]),                  # word table (V,E), dense
        pl.BlockSpec((TN, E), lambda i: (i, 0)),        # pos+tok (row-tiled)
        full_spec(params["w1"]), full_spec(params["b1"]),
        full_spec(params["w2"]), full_spec(params["b2"]),
        full_spec(wp_pad), full_spec(gamma_pad), full_spec(beta_pad),
    ]

    grid_spec = pltpu.PrefetchScalarGridSpec(
        num_scalar_prefetch=0,
        grid=(N // TN,),
        in_specs=in_specs,
        out_specs=pl.BlockSpec((TN, HP), lambda i: (i, 0)),
    )

    out = pl.pallas_call(
        deberta_emb_kernel,
        out_shape=jax.ShapeDtypeStruct((N, HP), jnp.float32),
        grid_spec=grid_spec,
        # rows are independent (no reduction axis) -> "parallel" lets v7x's two
        # TensorCores split the row tiles; harmless on v5e/v6e.
        compiler_params=pltpu.CompilerParams(dimension_semantics=("parallel",)),
    )(rowpack, params["word_tab"], pos_plus_tok,
      params["w1"], params["b1"], params["w2"], params["b2"],
      wp_pad, gamma_pad, beta_pad)

    return out[:, :H].reshape(B, S, H)


# ----------------------------- plain-JAX reference (for sanity check) -----------------------------
def reference(input_ids, input_float_mask, attn_mask, params):
    ids_i = input_ids.astype(jnp.int32)
    int_vec = params["word_tab"][ids_i]                                   # (B,S,E)
    float_vals = (input_ids * input_float_mask)[..., None]                # (B,S,1)
    h = jnp.maximum(float_vals @ params["w1"] + params["b1"], 0.0)
    float_vec = h @ params["w2"] + params["b2"]
    inputs_embeds = int_vec * (1.0 - input_float_mask)[..., None] + float_vec
    pos_vec = params["pos_tab"][jnp.arange(S)][None]                      # (1,S,E)
    tok_vec = params["tok_tab"][jnp.zeros((B, S), jnp.int32)]
    emb = inputs_embeds + pos_vec + tok_vec
    emb_h = emb @ params["wp"]
    mean = jnp.mean(emb_h, -1, keepdims=True)
    var = jnp.mean((emb_h - mean) ** 2, -1, keepdims=True)
    normed = (emb_h - mean) / jnp.sqrt(var + LN_EPS) * params["gamma"] + params["beta"]
    return normed * attn_mask[..., None]


# ----------------------------- main -----------------------------
if __name__ == "__main__":
    key = jax.random.PRNGKey(0)
    ks = jax.random.split(key, 12)

    # deterministic parameter init (shapes from the module's __init__)
    word_tab = 0.02 * jax.random.normal(ks[0], (V, E), jnp.float32)
    word_tab = word_tab.at[0].set(0.0)        # padding_idx=0 row zeroed (torch init behavior)
    pos_tab = 0.02 * jax.random.normal(ks[1], (P, E), jnp.float32)
    tok_tab = 0.02 * jax.random.normal(ks[2], (T, E), jnp.float32)
    params = dict(
        word_tab=word_tab, pos_tab=pos_tab, tok_tab=tok_tab,
        w1=0.1 * jax.random.normal(ks[3], (1, 2 * E), jnp.float32),
        b1=0.1 * jax.random.normal(ks[4], (1, 2 * E), jnp.float32),
        w2=0.1 * jax.random.normal(ks[5], (2 * E, E), jnp.float32),
        b2=0.1 * jax.random.normal(ks[6], (1, E), jnp.float32),
        wp=0.1 * jax.random.normal(ks[7], (E, H), jnp.float32),
        gamma=1.0 + 0.1 * jax.random.normal(ks[8], (1, H), jnp.float32),
        beta=0.1 * jax.random.normal(ks[9], (1, H), jnp.float32),
    )

    # example inputs: mixed integer-token / float-value rows
    int_tokens = jax.random.randint(ks[10], (B, S), 0, V).astype(jnp.float32)
    float_vals = jax.random.uniform(ks[11], (B, S), jnp.float32, 0.0, 10.0)
    input_float_mask = jax.random.bernoulli(ks[10], 0.3, (B, S)).astype(jnp.float32)
    input_ids = jnp.where(input_float_mask > 0, float_vals, int_tokens)
    attn_mask = jnp.ones((B, S), jnp.float32).at[:, -2:].set(0.0)

    out = deberta_embeddings_mixed(input_ids, input_float_mask, attn_mask, params)
    out = jax.block_until_ready(out)

    ref = reference(input_ids, input_float_mask, attn_mask, params)
    # Both kernel and reference run the MXU at DEFAULT precision (single-pass
    # bf16 inputs, f32 accumulate), so any residual difference is bounded by
    # bf16-input rounding of the same computation; 2e-2 covers it comfortably
    # at these magnitudes.
    np.testing.assert_allclose(np.asarray(out), np.asarray(ref), rtol=2e-2, atol=2e-2)

    print("KERNEL_OK")
</pallas_src>

<mosaic_0001>
module attributes {stable_mosaic.version = 11 : i64} {
  func.func @deberta_emb_kernel(%arg0: i32, %arg1: memref<8x8xf32, #tpu.memory_space<vmem>>, %arg2: memref<32x32xf32, #tpu.memory_space<vmem>>, %arg3: memref<8x32xf32, #tpu.memory_space<vmem>>, %arg4: memref<1x64xf32, #tpu.memory_space<vmem>>, %arg5: memref<1x64xf32, #tpu.memory_space<vmem>>, %arg6: memref<64x32xf32, #tpu.memory_space<vmem>>, %arg7: memref<1x32xf32, #tpu.memory_space<vmem>>, %arg8: memref<32x128xf32, #tpu.memory_space<vmem>>, %arg9: memref<1x128xf32, #tpu.memory_space<vmem>>, %arg10: memref<1x128xf32, #tpu.memory_space<vmem>>, %arg11: memref<8x128xf32, #tpu.memory_space<vmem>>) attributes {dimension_semantics = [#tpu.dimension_semantics<parallel>], iteration_bounds = array<i64: 2>, scalar_prefetch = 0 : i64, scratch_operands = 0 : i64, tpu.core_type = #tpu.core_type<tc>, window_params = [{transform_indices = @transform_0, window_bounds = array<i64: 8, 8>}, {pipeline_mode = #tpu.pipeline_mode<synchronous>, transform_indices = @transform_1, window_bounds = array<i64: 32, 32>}, {transform_indices = @transform_2, window_bounds = array<i64: 8, 32>}, {pipeline_mode = #tpu.pipeline_mode<synchronous>, transform_indices = @transform_3, window_bounds = array<i64: 1, 64>}, {pipeline_mode = #tpu.pipeline_mode<synchronous>, transform_indices = @transform_4, window_bounds = array<i64: 1, 64>}, {pipeline_mode = #tpu.pipeline_mode<synchronous>, transform_indices = @transform_5, window_bounds = array<i64: 64, 32>}, {pipeline_mode = #tpu.pipeline_mode<synchronous>, transform_indices = @transform_6, window_bounds = array<i64: 1, 32>}, {pipeline_mode = #tpu.pipeline_mode<synchronous>, transform_indices = @transform_7, window_bounds = array<i64: 32, 128>}, {pipeline_mode = #tpu.pipeline_mode<synchronous>, transform_indices = @transform_8, window_bounds = array<i64: 1, 128>}, {pipeline_mode = #tpu.pipeline_mode<synchronous>, transform_indices = @transform_9, window_bounds = array<i64: 1, 128>}, {transform_indices = @transform_10, window_bounds = array<i64: 8, 128>}]} {
    %c0 = arith.constant 0 : index
    %c0_0 = arith.constant 0 : index
    %0 = vector.load %arg1[%c0, %c0_0] : memref<8x8xf32, #tpu.memory_space<vmem>>, vector<8x8xf32>
    %1 = vector.extract_strided_slice %0 {offsets = [0, 0], sizes = [8, 1], strides = [1, 1]} : vector<8x8xf32> to vector<8x1xf32>
    %2 = vector.extract_strided_slice %0 {offsets = [0, 1], sizes = [8, 1], strides = [1, 1]} : vector<8x8xf32> to vector<8x1xf32>
    %3 = vector.extract_strided_slice %0 {offsets = [0, 2], sizes = [8, 1], strides = [1, 1]} : vector<8x8xf32> to vector<8x1xf32>
    %4 = vector.extract_strided_slice %0 {offsets = [0, 3], sizes = [8, 1], strides = [1, 1]} : vector<8x8xf32> to vector<8x1xf32>
    %5 = arith.fptosi %4 : vector<8x1xf32> to vector<8x1xi32>
    %6 = tpu.iota {dimensions = array<i32: 1>} : vector<8x32xi32>
    %7 = vector.broadcast %5 : vector<8x1xi32> to vector<8x32xi32>
    %8 = arith.cmpi eq, %6, %7 : vector<8x32xi32>
    %9 = arith.extui %8 : vector<8x32xi1> to vector<8x32xi32>
    %10 = arith.sitofp %9 : vector<8x32xi32> to vector<8x32xf32>
    %c0_1 = arith.constant 0 : index
    %c0_2 = arith.constant 0 : index
    %11 = vector.load %arg2[%c0_1, %c0_2] : memref<32x32xf32, #tpu.memory_space<vmem>>, vector<32x32xf32>
    %cst = arith.constant dense<0.000000e+00> : vector<8x32xf32>
    %12 = tpu.matmul %10, %11, %cst {dimension_numbers = #tpu.dot_dimension_numbers<[1], [0], [0], [1], [0, 0, 1, 1], [], []>, precision = #tpu.contract_precision<fp32>} : vector<8x32xf32>, vector<32x32xf32>, vector<8x32xf32> -> vector<8x32xf32>
    %13 = arith.mulf %1, %2 : vector<8x1xf32>
    %c0_3 = arith.constant 0 : index
    %c0_4 = arith.constant 0 : index
    %14 = vector.load %arg4[%c0_3, %c0_4] : memref<1x64xf32, #tpu.memory_space<vmem>>, vector<1x64xf32>
    %15 = vector.broadcast %13 : vector<8x1xf32> to vector<8x64xf32>
    %16 = vector.broadcast %14 : vector<1x64xf32> to vector<8x64xf32>
    %17 = arith.mulf %15, %16 : vector<8x64xf32>
    %c0_5 = arith.constant 0 : index
    %c0_6 = arith.constant 0 : index
    %18 = vector.load %arg5[%c0_5, %c0_6] : memref<1x64xf32, #tpu.memory_space<vmem>>, vector<1x64xf32>
    %19 = vector.broadcast %18 : vector<1x64xf32> to vector<8x64xf32>
    %20 = arith.addf %17, %19 : vector<8x64xf32>
    %cst_7 = arith.constant 0.000000e+00 : f32
    %21 = vector.broadcast %cst_7 : f32 to vector<8x64xf32>
    %22 = arith.maximumf %20, %21 : vector<8x64xf32>
    %c0_8 = arith.constant 0 : index
    %c0_9 = arith.constant 0 : index
    %23 = vector.load %arg6[%c0_8, %c0_9] : memref<64x32xf32, #tpu.memory_space<vmem>>, vector<64x32xf32>
    %cst_10 = arith.constant dense<0.000000e+00> : vector<8x32xf32>
    %24 = tpu.matmul %22, %23, %cst_10 {dimension_numbers = #tpu.dot_dimension_numbers<[1], [0], [0], [1], [0, 0, 1, 1], [], []>} : vector<8x64xf32>, vector<64x32xf32>, vector<8x32xf32> -> vector<8x32xf32>
    %c0_11 = arith.constant 0 : index
    %c0_12 = arith.constant 0 : index
    %25 = vector.load %arg7[%c0_11, %c0_12] : memref<1x32xf32, #tpu.memory_space<vmem>>, vector<1x32xf32>
    %26 = vector.broadcast %25 : vector<1x32xf32> to vector<8x32xf32>
    %27 = arith.addf %24, %26 : vector<8x32xf32>
    %cst_13 = arith.constant 1.000000e+00 : f32
    %28 = vector.broadcast %cst_13 : f32 to vector<8x1xf32>
    %29 = arith.subf %28, %2 : vector<8x1xf32>
    %30 = vector.broadcast %29 : vector<8x1xf32> to vector<8x32xf32>
    %31 = arith.mulf %12, %30 : vector<8x32xf32>
    %32 = arith.addf %31, %27 : vector<8x32xf32>
    %c0_14 = arith.constant 0 : index
    %c0_15 = arith.constant 0 : index
    %33 = vector.load %arg3[%c0_14, %c0_15] : memref<8x32xf32, #tpu.memory_space<vmem>>, vector<8x32xf32>
    %34 = arith.addf %32, %33 : vector<8x32xf32>
    %c0_16 = arith.constant 0 : index
    %c0_17 = arith.constant 0 : index
    %35 = vector.load %arg8[%c0_16, %c0_17] : memref<32x128xf32, #tpu.memory_space<vmem>>, vector<32x128xf32>
    %cst_18 = arith.constant dense<0.000000e+00> : vector<8x128xf32>
    %36 = tpu.matmul %34, %35, %cst_18 {dimension_numbers = #tpu.dot_dimension_numbers<[1], [0], [0], [1], [0, 0, 1, 1], [], []>} : vector<8x32xf32>, vector<32x128xf32>, vector<8x128xf32> -> vector<8x128xf32>
    %cst_19 = arith.constant dense<0.000000e+00> : vector<8xf32>
    %37 = vector.multi_reduction <add>, %36, %cst_19 [1] : vector<8x128xf32> to vector<8xf32>
    %38 = vector.shape_cast %37 : vector<8xf32> to vector<8x1xf32>
    %cst_20 = arith.constant 1.562500e-02 : f32
    %39 = vector.broadcast %cst_20 : f32 to vector<8x1xf32>
    %40 = arith.mulf %38, %39 : vector<8x1xf32>
    %41 = arith.mulf %36, %36 : vector<8x128xf32>
    %cst_21 = arith.constant dense<0.000000e+00> : vector<8xf32>
    %42 = vector.multi_reduction <add>, %41, %cst_21 [1] : vector<8x128xf32> to vector<8xf32>
    %43 = vector.shape_cast %42 : vector<8xf32> to vector<8x1xf32>
    %cst_22 = arith.constant 1.562500e-02 : f32
    %44 = vector.broadcast %cst_22 : f32 to vector<8x1xf32>
    %45 = arith.mulf %43, %44 : vector<8x1xf32>
    %46 = arith.mulf %40, %40 : vector<8x1xf32>
    %47 = arith.subf %45, %46 : vector<8x1xf32>
    %48 = vector.broadcast %40 : vector<8x1xf32> to vector<8x128xf32>
    %49 = arith.subf %36, %48 : vector<8x128xf32>
    %cst_23 = arith.constant 1.000000e-07 : f32
    %50 = vector.broadcast %cst_23 : f32 to vector<8x1xf32>
    %51 = arith.addf %47, %50 : vector<8x1xf32>
    %52 = math.rsqrt %51 : vector<8x1xf32>
    %53 = vector.broadcast %52 : vector<8x1xf32> to vector<8x128xf32>
    %54 = arith.mulf %49, %53 : vector<8x128xf32>
    %c0_24 = arith.constant 0 : index
    %c0_25 = arith.constant 0 : index
    %55 = vector.load %arg9[%c0_24, %c0_25] : memref<1x128xf32, #tpu.memory_space<vmem>>, vector<1x128xf32>
    %56 = vector.broadcast %55 : vector<1x128xf32> to vector<8x128xf32>
    %57 = arith.mulf %54, %56 : vector<8x128xf32>
    %c0_26 = arith.constant 0 : index
    %c0_27 = arith.constant 0 : index
    %58 = vector.load %arg10[%c0_26, %c0_27] : memref<1x128xf32, #tpu.memory_space<vmem>>, vector<1x128xf32>
    %59 = vector.broadcast %58 : vector<1x128xf32> to vector<8x128xf32>
    %60 = arith.addf %57, %59 : vector<8x128xf32>
    %61 = vector.broadcast %3 : vector<8x1xf32> to vector<8x128xf32>
    %62 = arith.mulf %60, %61 : vector<8x128xf32>
    %c0_28 = arith.constant 0 : index
    %c0_29 = arith.constant 0 : index
    %63 = vector.load %arg11[%c0_28, %c0_29] : memref<8x128xf32, #tpu.memory_space<vmem>>, vector<8x128xf32>
    tpu.vector_store %arg11[%c0_28, %c0_29], %62 {strides = array<i32>} : memref<8x128xf32, #tpu.memory_space<vmem>>, vector<8x128xf32>,
    return
  }
  func.func @transform_0(%arg0: i32) -> (i32, i32) {
    %c0_i32 = arith.constant 0 : i32
    %c0_i32_0 = arith.constant 0 : i32
    return %arg0, %c0_i32 : i32, i32
  }
  func.func @transform_1(%arg0: i32) -> (i32, i32) {
    %c0_i32 = arith.constant 0 : i32
    %c0_i32_0 = arith.constant 0 : i32
    %c0_i32_1 = arith.constant 0 : i32
    return %c0_i32, %c0_i32_0 : i32, i32
  }
  func.func @transform_2(%arg0: i32) -> (i32, i32) {
    %c0_i32 = arith.constant 0 : i32
    %c0_i32_0 = arith.constant 0 : i32
    return %arg0, %c0_i32 : i32, i32
  }
  func.func @transform_3(%arg0: i32) -> (i32, i32) {
    %c0_i32 = arith.constant 0 : i32
    %c0_i32_0 = arith.constant 0 : i32
    %c0_i32_1 = arith.constant 0 : i32
    return %c0_i32, %c0_i32_0 : i32, i32
  }
  func.func @transform_4(%arg0: i32) -> (i32, i32) {
    %c0_i32 = arith.constant 0 : i32
    %c0_i32_0 = arith.constant 0 : i32
    %c0_i32_1 = arith.constant 0 : i32
    return %c0_i32, %c0_i32_0 : i32, i32
  }
  func.func @transform_5(%arg0: i32) -> (i32, i32) {
    %c0_i32 = arith.constant 0 : i32
    %c0_i32_0 = arith.constant 0 : i32
    %c0_i32_1 = arith.constant 0 : i32
    return %c0_i32, %c0_i32_0 : i32, i32
  }
  func.func @transform_6(%arg0: i32) -> (i32, i32) {
    %c0_i32 = arith.constant 0 : i32
    %c0_i32_0 = arith.constant 0 : i32
    %c0_i32_1 = arith.constant 0 : i32
    return %c0_i32, %c0_i32_0 : i32, i32
  }
  func.func @transform_7(%arg0: i32) -> (i32, i32) {
    %c0_i32 = arith.constant 0 : i32
    %c0_i32_0 = arith.constant 0 : i32
    %c0_i32_1 = arith.constant 0 : i32
    return %c0_i32, %c0_i32_0 : i32, i32
  }
  func.func @transform_8(%arg0: i32) -> (i32, i32) {
    %c0_i32 = arith.constant 0 : i32
    %c0_i32_0 = arith.constant 0 : i32
    %c0_i32_1 = arith.constant 0 : i32
    return %c0_i32, %c0_i32_0 : i32, i32
  }
  func.func @transform_9(%arg0: i32) -> (i32, i32) {
    %c0_i32 = arith.constant 0 : i32
    %c0_i32_0 = arith.constant 0 : i32
    %c0_i32_1 = arith.constant 0 : i32
    return %c0_i32, %c0_i32_0 : i32, i32
  }
  func.func @transform_10(%arg0: i32) -> (i32, i32) {
    %c0_i32 = arith.constant 0 : i32
    %c0_i32_0 = arith.constant 0 : i32
    return %arg0, %c0_i32 : i32, i32
  }
}

</mosaic_0001>

<bundles_post_ra>
// kernel: deberta_embeddings_mixed.1
= control target key start
LH: loop header
LB: loop body
LE: loop exit
PB: predicated region body
PF: predicated region fallthrough
CT: control target
= control target key end

     0   :  { %s1497_s13 = smov 0   ;;  %s1647_s0 = inlined_call_operand.vmem [shape: f32[16,8], index: 0, kind: input, shape index: {}]   ;;  %s1648_s1 = inlined_call_operand.vmem [shape: f32[32,32], index: 1, kind: input, shape index: {}]   ;;  %s1649_s2 = inlined_call_operand.vmem [shape: f32[16,32], index: 2, kind: input, shape index: {}]   ;;  %s1650_s3 = inlined_call_operand.vmem [shape: f32[1,64], index: 3, kind: input, shape index: {}]   ;;  %s1651_s4 = inlined_call_operand.vmem [shape: f32[1,64], index: 4, kind: input, shape index: {}]   ;;  %s1652_s5 = inlined_call_operand.vmem [shape: f32[64,32], index: 5, kind: input, shape index: {}]   ;;  %s1653_s6 = inlined_call_operand.vmem [shape: f32[1,32], index: 6, kind: input, shape index: {}]   ;;  %s1654_s7 = inlined_call_operand.vmem [shape: f32[32,128], index: 7, kind: input, shape index: {}]   ;;  %s1655_s8 = inlined_call_operand.vmem [shape: f32[1,128], index: 8, kind: input, shape index: {}]   ;;  %s1656_s9 = inlined_call_operand.vmem [shape: f32[1,128], index: 9, kind: input, shape index: {}]   ;;  %s1657_s10 = inlined_call_operand.vmem [shape: f32[16,128], index: 10, kind: output, shape index: {}]  }
   0x1 LB: > { %s1178_s14 = sadd.s32 4294967295, %s1432_s13   ;;  %p1182_p0 = scmp.ge.s32.totalorder %s1432_s13, 1  ;;  %s1432_s13 = sphi %s1497_s13, %s20_s13  }
   0x2   : > { %p320_p1 = scmp.lt.s32.totalorder %s1432_s13, 3 }
   0x4   : > { %p321_p2 = pnand %p1182_p0, %p320_p1 }
   0x5   : > { %p360_p3 = scmp.lt.s32.totalorder (!%p321_p2), %s1178_s14, 1  ;;  %v382_v0 = vld [vmem:[%s1648_s1] sm:$0xff] (!%p321_p2)  ;;  %v1434_v1 = vmov (!%p321_p2), 3   ;;  %v1435_v2 = vmov (!%p321_p2), 0   ;;  %v383_v3 = vld [vmem:[%s1648_s1 + $0x8] sm:$0xff] (!%p321_p2)  ;;  %v384_v5 = vld [vmem:[%s1648_s1 + $0x10] sm:$0xff] (!%p321_p2)  ;;  %v374_v42 = vlaneseq (!%p321_p2) }
   0x6   : > { %324 = sbr.rel (%p321_p2) target bundleno = 868 (0x364), region = 60  ;;  %1420 = vset.pattern.permute.xlu0 (!%p321_p2), %v1434_v1  ;;  %1421 = vset.pattern.permute.xlu1 (!%p321_p2), %v1435_v2  ;;  %v391_v4 = vand.u32 (!%p321_p2), 4294901760, %v382_v0  ;;  %v385_v6 = vld [vmem:[%s1648_s1 + $0x18] sm:$0xff] (!%p321_p2)  ;;  %v1436_v7 = vmov (!%p321_p2), 0.0|0.0   ;;  %v394_v8 = vand.u32 (!%p321_p2), 4294901760, %v383_v3  ;;  %v397_v9 = vand.u32 (!%p321_p2), 4294901760, %v384_v5 }
   0x7   : > { %1345 = vmatprep.subr.bf16.mxu0 (!%p321_p2), %v1436_v7  ;;  %v400_v10 = vand.u32 (!%p321_p2), 4294901760, %v385_v6  ;;  %1339 = vmatprep.subr.bf16.mxu1 (!%p321_p2), %v1436_v7  ;;  %s1437_s27 = smov (!%p321_p2), 127   ;;  %vm1438_vm0 = vmmov (!%p321_p2), 0   ;;  %v1439_v33 = vmov (!%p321_p2), 0.0   ;;  %v1440_v43 = vmov (!%p321_p2), 1   ;;  %v902_v50 = vld [vmem:[%s1652_s5] sm:$0xff] (!%p321_p2) }
   0x8   : > { %v471_v11 = vsub.f32 (!%p321_p2), %v382_v0, %v391_v4  ;;  %v478_v12 = vsub.f32 (!%p321_p2), %v383_v3, %v394_v8  ;;  %v1521_v13 = vsub.f32 (!%p321_p2), %v384_v5, %v397_v9  ;;  %1262 = vmatprep.mubr.msk.f32.mxu0 (!%p321_p2), %vm1438_vm0, %v1439_v33  ;;  %1251 = vmatprep.mubr.msk.f32.mxu1 (!%p321_p2), %vm1438_vm0, %v1439_v33  ;;  %v375_v44 = vand.u32 (!%p321_p2), 127, %v374_v42  ;;  %v903_v51 = vld [vmem:[%s1652_s5 + $0x8] sm:$0xff] (!%p321_p2)  ;;  %v904_v55 = vld [vmem:[%s1652_s5 + $0x10] sm:$0xff] (!%p321_p2)  ;;  %v905_v56 = vld [vmem:[%s1652_s5 + $0x18] sm:$0xff] (!%p321_p2) }
   0x9   : > { %v492_v14 = vsub.f32 (!%p321_p2), %v385_v6, %v400_v10  ;;  %v1540_v35 = vpack.c.bf16 (!%p321_p2), %v394_v8, %v391_v4  ;;  %v1544_v36 = vpack.c.bf16 (!%p321_p2), %v400_v10, %v397_v9  ;;  %vm386_vm1 = vcmask (!%p321_p2), 261120   ;;  %v906_v58 = vld [vmem:[%s1652_s5 + $0x20] sm:$0xff] (!%p321_p2)  ;;  %v907_v59 = vld [vmem:[%s1652_s5 + $0x28] sm:$0xff] (!%p321_p2)  ;;  %v908_v61 = vld [vmem:[%s1652_s5 + $0x30] sm:$0xff] (!%p321_p2) }
   0xa   : > { %v472_v15 = vand.u32 (!%p321_p2), 4294901760, %v471_v11  ;;  %v479_v17 = vand.u32 (!%p321_p2), 4294901760, %v478_v12  ;;  %v486_v18 = vand.u32 (!%p321_p2), 4294901760, %v1521_v13  ;;  %v1352_v32 = vpack.c.bf16 (!%p321_p2), %v478_v12, %v471_v11  ;;  %v909_v62 = vld [vmem:[%s1652_s5 + $0x38] sm:$0xff] (!%p321_p2)  ;;  %v1190_v0 = vld [vmem:[%s1650_s3] ss:$0 sm:$0xff] (!%p321_p2) }
   0xb   : > { %v493_v19 = vand.u32 (!%p321_p2), 4294901760, %v492_v14  ;;  %v1355_v34 = vpack.c.bf16 (!%p321_p2), %v492_v14, %v1521_v13  ;;  %1341 = vmatpush3.bf16.msra.mxu1 (!%p321_p2), %v1540_v35  ;;  %v1376_v54 = vpack.c.bf16 (!%p321_p2), %v903_v51, %v902_v50  ;;  %v1379_v57 = vpack.c.bf16 (!%p321_p2), %v905_v56, %v904_v55  ;;  %v1191_v1 = vld [vmem:[%s1651_s4] ss:$0 sm:$0xff] (!%p321_p2)  ;;  %v1002_v8 = vld [vmem:[%s1654_s7 + $0x8] sm:$0xff] (!%p321_p2)  ;;  %v1003_v10 = vld [vmem:[%s1654_s7 + $0x10] sm:$0xff] (!%p321_p2) }
   0xc   : > { %v473_v21 = vsub.f32 (!%p321_p2), %v471_v11, %v472_v15  ;;  %v480_v22 = vsub.f32 (!%p321_p2), %v478_v12, %v479_v17  ;;  %v487_v23 = vsub.f32 (!%p321_p2), %v1521_v13, %v486_v18  ;;  %1342 = vmatprep.subr.bf16.mxu1 (!%p321_p2), %v1436_v7  ;;  %v1364_v37 = vpack.c.bf16 (!%p321_p2), %v479_v17, %v472_v15  ;;  %v1001_v6 = vld [vmem:[%s1654_s7] sm:$0xff] (!%p321_p2)  ;;  %v1004_v11 = vld [vmem:[%s1654_s7 + $0x18] sm:$0xff] (!%p321_p2) }
   0xd   : > { %s1659_s14 = smov (!%p360_p3, %s1178_s14), 1  ;;  %v494_v24 = vsub.f32 %v492_v14, %v493_v19  ;;  %v1367_v38 = vpack.c.bf16 %v493_v19, %v486_v18  ;;  %v1382_v60 = vpack.c.bf16 %v907_v59, %v906_v58  ;;  %v1385_v63 = vpack.c.bf16 %v909_v62, %v908_v61 }
   0xe   : > { %s1519_s23 = sshll.u32 %s1659_s14, 3  ;;  %v474_v26 = vand.u32 4294901760, %v473_v21  ;;  %v481_v27 = vand.u32 4294901760, %v480_v22  ;;  %v488_v28 = vand.u32 4294901760, %v487_v23  ;;  %vm917_vm3 = vcmask 523264  }
   0xf   : > { %s363_s26 = scalar_lea.vmem %s1647_s0, %s1519_s23  ;;  %v495_v29 = vand.u32 4294901760, %v494_v24  ;;  %1344 = vmatpush3.bf16.msra.mxu1 %v1544_v36  ;;  %v1388_v9 = vpack.c.bf16 %v1002_v8, %v1001_v6  ;;  %v1391_v12 = vpack.c.bf16 %v1004_v11, %v1003_v10  ;;  %s367_s24 = scalar_lea.vmem %s1649_s2, %s1519_s23 }
  0x10   : > { %v1527_v16 = vld [vmem:[%s363_s26] sm:$0xff]  ;;  %v1346_v30 = vpack.c.bf16 %v481_v27, %v474_v26  ;;  %1375 = vmatprep.subr.bf16.mxu1 %v1436_v7  ;;  %v1441_v27 = vmov 2   ;;  %s371_s11 = scalar_lea.vmem %s1657_s10, %s1519_s23 }
  0x11   : > { %876 = vrot.lane.b32.xlu0 %v1527_v16, %s1437_s27  ;;  %v1402_v20 = vtrunc.f32 %v1527_v16  ;;  %v1349_v31 = vpack.c.bf16 %v495_v29, %v488_v28  ;;  %v991_v41 = vsub.f32 1.0, %v1527_v16  ;;  %v999_v24 = vld [vmem:[%s367_s24] sm:$0xff] }
  0x12   : > { %1347 = vmatpush3.bf16.msra.mxu0 %v1346_v30 }
  0x13   : > { %v1403_v25 = vcvt.f32.s32 %v1402_v20  ;;  %1348 = vmatprep.subr.bf16.mxu0 %v1436_v7 }
  0x15   : > { %377 = vperm.xlu0 %1420, %v1403_v25  }
  0x16   : > { %1350 = vmatpush3.bf16.msra.mxu0 %v1349_v31 }
  0x17   : > { %1351 = vmatprep.subr.bf16.mxu0 %v1436_v7 }
  0x19   : > { %1423 = vset.pattern.permute.xlu0 %v1441_v27 }
  0x83   : > { %v877_v39 = vpop.permute.xlu0 %876 }
  0x84   : > { %v879_v40 = vmul.f32 %v877_v39, %v1527_v16 }
  0x86   : > { %883 = vperm.xlu1 %1421, %v879_v40   ;;  %v1195_v40 = vld [vmem:[%s1655_s8] ss:$0 sm:$0xff] }
  0x8a   : > { %1422 = vset.pattern.permute.xlu1 %v1440_v43 }
  0x8b   : > { %994 = vperm.xlu1 %1422, %v991_v41  }
  0x94   : > { %v378_v45 = vpop.permute.xlu0 %377 }
  0x95   : > { %vm379_vm2 = vcmp.eq.s32.totalorder %v375_v44, %v378_v45 }
  0x96   : > { %v1186_v46 = vsel %vm379_vm2, 1.0, %v1439_v33 }
  0x97   : > { %v388_v47 = vsel %vm386_vm1, %v1186_v46, 0  ;;  %1263 = vmatmul.mubr.msk.f32.vlgmr.msra.gmra.mrb[0].mxu0 %vm386_vm1, %v1186_v46 }
  0x98   : > { %v460_v48 = vsub.f32 %v388_v47, %v388_v47  ;;  %1353 = vmatpush3.bf16.msra.mxu0 %v1352_v32  ;;  %1273 = vmatprep.mubr.msk.f32.mxu0 %vm1438_vm0, %v1439_v33 }
  0x99   : > { %1354 = vmatprep.subr.bf16.mxu0 %v1436_v7 }
  0x9a   : > { %v461_v49 = vand.u32 4294901760, %v460_v48 }
  0x9c   : > { %1356 = vmatpush3.bf16.msra.mxu0 %v1355_v34  ;;  %v462_v52 = vsub.f32 %v460_v48, %v461_v49 }
  0x9d   : > { %1357 = vmatprep.subr.bf16.mxu0 %v1436_v7 }
  0x9e   : > { %v463_v53 = vand.u32 4294901760, %v462_v52 }
  0x9f   : > { %1274 = vmatmul.mubr.f32.vlgmr.msra.gmra.mrb[0].mxu0 %v460_v48 }
  0xa0   : > { %1359 = vmatpush3.bf16.msra.mxu0 %v1540_v35  ;;  %1284 = vmatprep.mubr.msk.f32.mxu0 %vm1438_vm0, %v1439_v33 }
  0xa1   : > { %1360 = vmatprep.subr.bf16.mxu0 %v1436_v7  ;;  %1252 = vmatmul.mubr.f32.vlgmr.msra.gmra.mrb[0].mxu1 %v463_v53 }
  0xa2   : > { %1377 = vmatpush3.bf16.msra.mxu1 %v1376_v54  ;;  %1325 = vmatprep.mubr.msk.f32.mxu1 %vm1438_vm0, %v1439_v33 }
  0xa3   : > { %1378 = vmatprep.subr.bf16.mxu1 %v1436_v7 }
  0xa4   : > { %1362 = vmatpush3.bf16.msra.mxu0 %v1544_v36 }
  0xa5   : > { %1363 = vmatprep.subr.bf16.mxu0 %v1436_v7 }
  0xa6   : > { %1380 = vmatpush3.bf16.msra.mxu1 %v1379_v57 }
  0xa7   : > { %1285 = vmatmul.mubr.f32.vlgmr.msra.gmra.mrb[0].mxu0 %v461_v49  ;;  %1381 = vmatprep.subr.bf16.mxu1 %v1436_v7 }
  0xa8   : > { %1365 = vmatpush3.bf16.msra.mxu0 %v1364_v37  ;;  %1295 = vmatprep.mubr.msk.f32.mxu0 %vm1438_vm0, %v1439_v33 }
  0xa9   : > { %1366 = vmatprep.subr.bf16.mxu0 %v1436_v7 }
  0xaa   : > { %1383 = vmatpush3.bf16.msra.mxu1 %v1382_v60 }
  0xab   : > { %1384 = vmatprep.subr.bf16.mxu1 %v1436_v7 }
  0xac   : > { %1368 = vmatpush3.bf16.msra.mxu0 %v1367_v38 }
  0xad   : > { %1369 = vmatprep.subr.bf16.mxu0 %v1436_v7 }
  0xae   : > { %1386 = vmatpush3.bf16.msra.mxu1 %v1385_v63 }
  0xaf   : > { %1296 = vmatmul.mubr.msk.f32.vlgmr.msra.gmra.mrb[0].mxu0 %vm386_vm1, %v1186_v46  ;;  %1387 = vmatprep.subr.bf16.mxu1 %v1436_v7 }
  0xb0   : > { %1371 = vmatpush3.bf16.msra.mxu0 %v1540_v35  ;;  %1306 = vmatprep.mubr.msk.f32.mxu0 %vm1438_vm0, %v1439_v33 }
  0xb1   : > { %1372 = vmatprep.subr.bf16.mxu0 %v1436_v7 }
  0xb4   : > { %1374 = vmatpush3.bf16.msra.mxu0 %v1544_v36 }
  0xb7   : > { %1307 = vmatmul.mubr.msk.f32.vlgmr.msra.gmra.mrb[0].mxu0 %vm386_vm1, %v1186_v46 }
 0x105   : > { %v884_v2 = vpop.permute.xlu1 %883 }
 0x106   : > { %v892_v3 = vmul.f32 %v1190_v0, %v884_v2 }
 0x108   : > { %v900_v4 = vadd.f32 %v1191_v1, %v892_v3 }
 0x10a   : > { %v901_v5 = vmax.f32 %v900_v4, 0.0  ;;  %v995_v19 = vpop.permute.xlu1 %994 }
 0x10c   : > { %1326 = vmatmul.mubr.msk.f32.vlgmr.msra.gmra.mrb[2].mxu1 %vm917_vm3, %v901_v5 }
 0x10d   : > { %1336 = vmatprep.mubr.msk.f32.mxu1 %vm1438_vm0, %v1439_v33  ;;  %1389 = vmatpush3.bf16.msra.mxu1 %v1388_v9 }
 0x10e   : > { %1390 = vmatprep.subr.bf16.mxu1 %v1436_v7  ;;  %v1192_v7 = vld [vmem:[%s1653_s6] ss:$0 sm:$0xff] }
 0x111   : > { %1392 = vmatpush3.bf16.msra.mxu1 %v1391_v12 }
 0x174   : > { %v465_v13 = vpop.f32.mrb[0].mxu1 }
 0x175   : > { %v1253_v14 = vpop.f32.mrb[1].mxu1 }
 0x18a   : > { %v871_v15 = vpop.f32.mrb[0].mxu0 }
 0x18b   : > { %v1393_v17 = vadd.f32 %v871_v15, %v465_v13  ;;  %v1308_v18 = vpop.f32.mrb[1].mxu0 }
 0x18d   : > { %v997_v21 = vmul.f32 %v1393_v17, %v995_v19 }
 0x1df   : > { %v987_v20 = vpop.f32.mrb[2].mxu1 }
 0x1e0   : > { %v988_v22 = vadd.f32 %v1192_v7, %v987_v20  ;;  %v1327_v23 = vpop.f32.mrb[3].mxu1 }
 0x1e2   : > { %v998_v25 = vadd.f32 %v997_v21, %v988_v22 }
 0x1e4   : > { %v1000_v26 = vadd.f32 %v999_v24, %v998_v25 }
 0x1e6   : > { %1337 = vmatmul.mubr.msk.f32.vlgmr.msra.gmra.mrb[4].mxu1 %vm386_vm1, %v1000_v26 }
 0x2b9   : > { %v1074_v28 = vpop.f32.mrb[4].mxu1 }
 0x2ba   : > { %1078 = vadd.xlane.f32.xlu1 %v1074_v28  ;;  %v1338_v29 = vpop.f32.mrb[5].mxu1  ;;  %v1081_v30 = vmul.f32 %v1074_v28, %v1074_v28 }
 0x2bc   : > { %1082 = vadd.xlane.f32.xlu0 %v1081_v30 }
 0x2d2   : > { %1108 = vperm.xlu0 %1423, %v1527_v16   ;;  %v1196_v16 = vld [vmem:[%s1656_s9] ss:$0 sm:$0xff] }
 0x347   : > { %v1079_v31 = vpop.xlane.xlu1 %1078 }
 0x348   : > { %v1080_v32 = vmul.f32 0.015625, %v1079_v31 }
 0x349   : > { %v1083_v33 = vpop.xlane.xlu0 %1082 }
 0x34a   : > { %v1085_v34 = vmul.f32 %v1080_v32, %v1080_v32  ;;  %v1084_v35 = vmul.f32 0.015625, %v1083_v33  ;;  %v1087_v38 = vsub.f32 %v1074_v28, %v1080_v32 }
 0x34c   : > { %v1086_v36 = vsub.f32 %v1084_v35, %v1085_v34 }
 0x34e   : > { %v1088_v37 = vadd.f32 1e-07, %v1086_v36 }
 0x350   : > { %1424 = vrsqrt.f32 %v1088_v37 }
 0x351   : > { %v1109_v43 = vpop.permute.xlu0 %1108 }
 0x35a   : > { %v1425_v39 = vpop.eup %1424 }
 0x35b   : > { %v1090_v41 = vmul.f32 %v1425_v39, %v1087_v38 }
 0x35d   : > { %v1098_v42 = vmul.f32 %v1195_v40, %v1090_v41 }
 0x35f   : > { %v1106_v44 = vadd.f32 %v1196_v16, %v1098_v42 }
 0x361   : > { %v1111_v45 = vmul.f32 %v1109_v43, %v1106_v44 }
 0x363   : > { %1112 = vst [vmem:[%s371_s11] sm:$0xff] %v1111_v45 }
 0x364 PF: > { %s20_s13 = sadd.s32 1, %s1432_s13  }
 0x365   : > { %p17_p4 = scmp.ge.s32.totalorder %s20_s13, 4  }
 0x367   :  { %19 = sbr.rel (!%p17_p4) target bundleno = 1 (0x1), region = 93 }

</bundles_post_ra>
